<compile_context>
chip_gen: v5e
topology: v5e:2x2
jax: 0.10.0
libtpu: 0.0.40
codegen_flags: <defaults>
</compile_context>

<pallas_src>
import functools
import math

import jax
import jax.numpy as jnp
from jax.experimental import pallas as pl
from jax.experimental.pallas import tpu as pltpu

_LANE_CANDIDATES = (8192, 4096, 2048, 1024, 512, 256, 128)
_TARGET_BLOCK_ELEMS = 4 * 1024 * 1024   # ~16 MiB f32 output per grid step
_MIN_PALLAS_OUT_BYTES = 512 * 1024      # below this, one fused XLA op wins
_MIB = 1024 * 1024


def _to_float_normalize_kernel(x_ref, o_ref, *, inv: float):
    # out = float(x) * (1/factor)  (multiply instead of true divide; <=1 ULP
    # from torch's div_ and keeps the VALU slot free on this DMA-bound kernel).
    o_ref[...] = x_ref[...].astype(jnp.float32) * jnp.float32(inv)


def _vmem_capacity_bytes() -> int:
    try:
        return int(pltpu.get_tpu_info().vmem_capacity_bytes)
    except Exception:
        return 64 * _MIB   # conservative fallback, valid on every generation


def _is_multi_tensorcore_chip() -> bool:
    try:
        kind = jax.devices()[0].device_kind.lower()
    except Exception:
        return False
    return ("v7" in kind) or ("7x" in kind)


def _pallas_normalize_flat(flat: jax.Array, inv: float) -> jax.Array:
    """Kernel path for a flat array whose length is a multiple of 128."""
    n = flat.shape[0]
    lane = next(c for c in _LANE_CANDIDATES if n % c == 0)
    rows = n // lane
    x2d = flat.reshape(rows, lane)

    # Generation-aware block sizing from actual per-element traffic.
    per_elem_bytes = flat.dtype.itemsize + 4           # input bytes + f32 output
    vmem_cap = _vmem_capacity_bytes()
    vmem_limit = max(32 * _MIB, min((vmem_cap * 3) // 4, 96 * _MIB))
    # Double-buffered (input + output) working set must fit under the limit.
    block_elems_cap = max(lane * 32, (vmem_limit - 4 * _MIB) // (2 * per_elem_bytes))
    block_elems = min(_TARGET_BLOCK_ELEMS, block_elems_cap)

    # Row tile: multiple of 32 (valid sublane tiling for u8/bf16/f32 blocks),
    # or the full rows extent (exempt from the (8,128) divisibility rule).
    tr_max = max(32, (block_elems // lane) // 32 * 32)
    tr = rows if rows <= tr_max else tr_max
    grid = (pl.cdiv(rows, tr),)

    # v7x: actually engage both TensorCores; plain "parallel" on single-TC chips.
    core_parallel = getattr(pltpu, "CORE_PARALLEL", None)
    if _is_multi_tensorcore_chip() and core_parallel is not None and grid[0] >= 2:
        dim_sem = (core_parallel,)
    else:
        dim_sem = ("parallel",)

    kernel = functools.partial(_to_float_normalize_kernel, inv=inv)
    out2d = pl.pallas_call(
        kernel,
        out_shape=jax.ShapeDtypeStruct((rows, lane), jnp.float32),
        grid=grid,
        in_specs=[pl.BlockSpec((tr, lane), lambda i: (i, 0))],
        out_specs=pl.BlockSpec((tr, lane), lambda i: (i, 0)),
        compiler_params=pltpu.CompilerParams(
            dimension_semantics=dim_sem,
            vmem_limit_bytes=vmem_limit,
        ),
        cost_estimate=pl.CostEstimate(
            flops=n, transcendentals=0, bytes_accessed=per_elem_bytes * n
        ),
    )(x2d)
    return out2d.reshape(-1)


def to_float_and_normalize(
    x: jax.Array, normalize_factor: float, *, force_pallas: bool = False
) -> jax.Array:
    """out = x.astype(float32) / normalize_factor, same shape as x."""
    orig_shape = x.shape
    factor = float(normalize_factor)
    inv = 1.0 / factor
    n = math.prod(orig_shape) if orig_shape else 1

    def _xla(v):
        return v.astype(jnp.float32) * jnp.float32(inv)

    # Tiny / empty inputs: a single fused XLA op beats kernel-launch overhead.
    if n == 0 or (not force_pallas and n * 4 < _MIN_PALLAS_OUT_BYTES):
        return _xla(x)

    flat = x.reshape(-1)

    if n % 128 == 0:
        return _pallas_normalize_flat(flat, inv).reshape(orig_shape)

    # Awkward element count: avoid the old pad+crop (which ~3x'd HBM traffic).
    # Run the kernel on the 128-aligned prefix, the tiny tail through XLA.
    n_main = (n // 128) * 128
    if n_main == 0 or (not force_pallas and n_main * 4 < _MIN_PALLAS_OUT_BYTES):
        return _xla(x)
    main = _pallas_normalize_flat(flat[:n_main], inv)
    tail = _xla(flat[n_main:])
    return jnp.concatenate([main, tail]).reshape(orig_shape)


if __name__ == "__main__":
    key = jax.random.PRNGKey(0)
    k0, k1, k2 = jax.random.split(key, 3)
    factor = 255.0

    # 1) Small NCHW uint8 batch (module's typical use). Force the Pallas path
    #    so the kernel itself is exercised; also check the XLA fast path.
    x_small = jax.random.randint(k0, (2, 4, 16, 16), 0, 256, dtype=jnp.int32).astype(
        jnp.uint8
    )
    out_small = jax.block_until_ready(
        to_float_and_normalize(x_small, factor, force_pallas=True)
    )
    ref_small = x_small.astype(jnp.float32) / jnp.float32(factor)
    assert out_small.shape == x_small.shape and out_small.dtype == jnp.float32
    assert jnp.allclose(out_small, ref_small, atol=1e-6, rtol=1e-6)
    out_fast = jax.block_until_ready(to_float_and_normalize(x_small, factor))
    assert jnp.allclose(out_fast, ref_small, atol=1e-6, rtol=1e-6)

    # 2) Larger image batch -> lane-dense slab through the Pallas path.
    x_big = jax.random.randint(k1, (4, 3, 224, 224), 0, 256, dtype=jnp.int32).astype(
        jnp.uint8
    )
    out_big = jax.block_until_ready(to_float_and_normalize(x_big, factor))
    ref_big = x_big.astype(jnp.float32) / jnp.float32(factor)
    assert out_big.shape == x_big.shape and out_big.dtype == jnp.float32
    assert jnp.allclose(out_big, ref_big, atol=1e-6, rtol=1e-6)

    # 3) Awkward shape (element count not a multiple of 128) -> prefix kernel
    #    + XLA tail (no pad/crop copies).
    x_odd = jax.random.randint(k2, (2, 3, 17, 19), 0, 256, dtype=jnp.int32).astype(
        jnp.uint8
    )
    out_odd = jax.block_until_ready(
        to_float_and_normalize(x_odd, factor, force_pallas=True)
    )
    ref_odd = x_odd.astype(jnp.float32) / jnp.float32(factor)
    assert out_odd.shape == x_odd.shape and out_odd.dtype == jnp.float32
    assert jnp.allclose(out_odd, ref_odd, atol=1e-6, rtol=1e-6)

    print("KERNEL_OK")
</pallas_src>

<mosaic_0001>
module attributes {stable_mosaic.version = 11 : i64} {
  func.func @_to_float_normalize_kernel(%arg0: i32, %arg1: memref<1x2048xi8, #tpu.memory_space<vmem>>, %arg2: memref<1x2048xf32, #tpu.memory_space<vmem>>) attributes {dimension_semantics = [#tpu.dimension_semantics<parallel>], iteration_bounds = array<i64: 1>, scalar_prefetch = 0 : i64, scratch_operands = 0 : i64, tpu.core_type = #tpu.core_type<tc>, window_params = [{transform_indices = @transform_0, window_bounds = array<i64: 1, 2048>}, {transform_indices = @transform_1, window_bounds = array<i64: 1, 2048>}]} {
    %c0 = arith.constant 0 : index
    %c0_0 = arith.constant 0 : index
    %0 = vector.load %arg1[%c0, %c0_0] : memref<1x2048xi8, #tpu.memory_space<vmem>>, vector<1x2048xi8>
    %1 = arith.uitofp %0 : vector<1x2048xi8> to vector<1x2048xf32>
    %cst = arith.constant 0.00392156886 : f32
    %2 = vector.broadcast %cst : f32 to vector<1x2048xf32>
    %3 = arith.mulf %1, %2 : vector<1x2048xf32>
    %c0_1 = arith.constant 0 : index
    %c0_2 = arith.constant 0 : index
    %4 = vector.load %arg2[%c0_1, %c0_2] : memref<1x2048xf32, #tpu.memory_space<vmem>>, vector<1x2048xf32>
    tpu.vector_store %arg2[%c0_1, %c0_2], %3 {strides = array<i32>} : memref<1x2048xf32, #tpu.memory_space<vmem>>, vector<1x2048xf32>,
    return
  }
  func.func @transform_0(%arg0: i32) -> (i32, i32) {
    %c0_i32 = arith.constant 0 : i32
    %c0_i32_0 = arith.constant 0 : i32
    return %arg0, %c0_i32 : i32, i32
  }
  func.func @transform_1(%arg0: i32) -> (i32, i32) {
    %c0_i32 = arith.constant 0 : i32
    %c0_i32_0 = arith.constant 0 : i32
    return %arg0, %c0_i32 : i32, i32
  }
}

</mosaic_0001>

<bundles_post_ra>
// kernel: tpu_custom_call.1
= control target key start
LH: loop header
LB: loop body
LE: loop exit
PB: predicated region body
PF: predicated region fallthrough
CT: control target
= control target key end

     0   :  { %6 = vsyncpa [#allocation3], 0  ;;  %s207_s0 = inlined_call_operand.hbm [shape: u8[1,2048], index: 0, kind: input, shape index: {}]   ;;  %s208_s1 = inlined_call_operand.hbm [shape: f32[1,2048], index: 1, kind: output, shape index: {}]  }
   0x1   :  { %7 = vsyncpa [#allocation4], 0  ;;  %s13_s8 = sshll.u32 %s207_s0, 4  ;;  %s175_s9 = smov [#allocation2]   ;;  %s14_s8 = int_to_ptr.hbm [resolvable:$true] %s13_s8 }
   0x2   :  { %s15_s10 = sshll.u32 %s175_s9, 4  ;;  %s16_s10 = int_to_ptr.vmem [resolvable:$true] %s15_s10 }
   0x3   :  { %18 = dma.hbm_to_vmem [thread:$0]  %s14_s8, 256, %s16_s10, [#allocation3]  }
   0x4   :  { %171 = dma.done.wait [#allocation3], 256  }
   0x5   :  { %172 = vsyncadd [#allocation3], 4294967040  ;;  %v23_v0 = vld [vmem:[#allocation2] sm:$0xff]  ;;  %vm79_vm0 = vcmask 1040384   ;;  %vm81_vm1 = vcmask 1042434   ;;  %v24_v1 = vld [vmem:[#allocation2 + $0x8] sm:$0xff] }
   0x6   :  { %v25_v2 = vunpack.c.0.s8 %v23_v0  ;;  %v26_v3 = vunpack.c.1.s8 %v23_v0  ;;  %v27_v4 = vunpack.c.2.s8 %v23_v0  ;;  %v28_v5 = vunpack.c.3.s8 %v23_v0  ;;  %s176_s0 = smov [#allocation5]   ;;  %s111_s14 = sshll.u32 %s208_s1, 4  ;;  %s112_s14 = int_to_ptr.hbm [resolvable:$true] %s111_s14 }
   0x7   :  { %vm83_vm2 = vcmask 1041408   ;;  %vm85_vm3 = vcmask 1044484   ;;  %vm87_vm4 = vcmask 1046534   ;;  %vm89_vm5 = vcmask 1045508   ;;  %s109_s11 = sshll.u32 %s176_s0, 4  ;;  %s110_s11 = int_to_ptr.vmem [resolvable:$true] %s109_s11 }
   0x8   :  { %v29_v6 = vunpack.c.0.s8 %v24_v1  ;;  %v30_v7 = vunpack.c.1.s8 %v24_v1  ;;  %v31_v8 = vunpack.c.2.s8 %v24_v1  ;;  %v32_v9 = vunpack.c.3.s8 %v24_v1 }
   0x9   :  { %v33_v10 = vand.u32 255, %v25_v2  ;;  %v34_v11 = vand.u32 255, %v26_v3  ;;  %v35_v12 = vand.u32 255, %v27_v4  ;;  %v36_v13 = vand.u32 255, %v28_v5 }
   0xa   :  { %v37_v14 = vand.u32 255, %v29_v6  ;;  %v38_v15 = vand.u32 255, %v30_v7  ;;  %v39_v16 = vand.u32 255, %v31_v8  ;;  %v40_v17 = vand.u32 255, %v32_v9 }
   0xb   :  { %v41_v18 = vcvt.s32.f32 %v33_v10  ;;  %v42_v19 = vcvt.s32.f32 %v34_v11  ;;  %v43_v20 = vcvt.s32.f32 %v35_v12  ;;  %v44_v21 = vcvt.s32.f32 %v36_v13 }
   0xc   :  { %vm91_vm6 = vcmask 1043456   ;;  %v45_v22 = vcvt.s32.f32 %v37_v14  ;;  %v46_v23 = vcvt.s32.f32 %v38_v15  ;;  %v47_v24 = vcvt.s32.f32 %v39_v16 }
   0xd   :  { %v49_v25 = vmul.f32 0.003921569, %v41_v18  ;;  %v50_v26 = vmul.f32 0.003921569, %v42_v19  ;;  %v51_v27 = vmul.f32 0.003921569, %v43_v20  ;;  %v48_v28 = vcvt.s32.f32 %v40_v17 }
   0xe   :  { %v52_v29 = vmul.f32 0.003921569, %v44_v21  ;;  %v53_v30 = vmul.f32 0.003921569, %v45_v22  ;;  %v54_v31 = vmul.f32 0.003921569, %v46_v23 }
   0xf   :  { %v65_v32 = vrot.slane %v49_v25, 3  ;;  %v66_v33 = vrot.slane %v50_v26, 6  ;;  %v67_v34 = vrot.slane %v50_v26, 1  ;;  %v68_v35 = vrot.slane %v51_v27, 4 }
  0x10   :  { %v69_v36 = vrot.slane %v51_v27, 7  ;;  %v70_v37 = vrot.slane %v52_v29, 2  ;;  %v71_v38 = vrot.slane %v52_v29, 5  ;;  %v55_v39 = vmul.f32 0.003921569, %v47_v24 }
  0x11   :  { %v80_v40 = vsel %vm79_vm0, %v49_v25, %v65_v32  ;;  %v82_v41 = vsel %vm81_vm1, %v66_v33, %v67_v34  ;;  %v56_v42 = vmul.f32 0.003921569, %v48_v28  ;;  %v72_v43 = vrot.slane %v53_v30, 3 }
  0x12   :  { %v84_v44 = vsel %vm83_vm2, %v80_v40, %v82_v41  ;;  %v86_v45 = vsel %vm85_vm3, %v68_v35, %v69_v36  ;;  %v88_v46 = vsel %vm87_vm4, %v70_v37, %v71_v38  ;;  %v73_v47 = vrot.slane %v54_v31, 6 }
  0x13   :  { %v90_v48 = vsel %vm89_vm5, %v86_v45, %v88_v46  ;;  %v74_v49 = vrot.slane %v54_v31, 1  ;;  %v75_v50 = vrot.slane %v55_v39, 4  ;;  %v76_v51 = vrot.slane %v55_v39, 7 }
  0x14   :  { %v92_v52 = vsel %vm91_vm6, %v84_v44, %v90_v48  ;;  %v77_v53 = vrot.slane %v56_v42, 2  ;;  %v78_v54 = vrot.slane %v56_v42, 5  ;;  %v93_v55 = vsel %vm79_vm0, %v53_v30, %v72_v43 }
  0x15   :  { %102 = vst [vmem:[#allocation5] sm:$0xff] %v92_v52  ;;  %v94_v56 = vsel %vm81_vm1, %v73_v47, %v74_v49  ;;  %v96_v57 = vsel %vm85_vm3, %v75_v50, %v76_v51 }
  0x16   :  { %v95_v58 = vsel %vm83_vm2, %v93_v55, %v94_v56  ;;  %v97_v59 = vsel %vm87_vm4, %v77_v53, %v78_v54 }
  0x17   :  { %v98_v60 = vsel %vm89_vm5, %v96_v57, %v97_v59 }
  0x18   :  { %v99_v61 = vsel %vm91_vm6, %v95_v58, %v98_v60 }
  0x19   :  { %103 = vst [vmem:[#allocation5 + $0x8] sm:$0xff] %v99_v61 }
  0x1a   :  { %114 = dma.vmem_to_hbm [thread:$0]  %s110_s11, 256, %s112_s14, [#allocation4]  }
  0x1b   :  { %173 = dma.done.wait [#allocation4], 256  }
  0x1c   :  { %174 = vsyncadd [#allocation4], 4294967040 }
  0x1d   :  { %119 = vsyncpa [#allocation3], 1 }
  0x1e   :  { %120 = vsyncpa [#allocation4], 1 }

</bundles_post_ra>
